<compile_context>
chip_gen: v7x
topology: tpu7x:2x2x1
jax: 0.10.0
libtpu: 0.0.40
codegen_flags: <defaults>
</compile_context>

<pallas_src>
import jax
import jax.numpy as jnp
from jax.experimental import pallas as pl
from jax.experimental.pallas import tpu as pltpu

MIN_LOG_SIGMA = -20.0
MAX_LOG_SIGMA = 2.0
LANE = 128


def _round_up(x, m):
    return (x + m - 1) // m * m


# --------------------------------------------------------------------------
# Kernel
# --------------------------------------------------------------------------
def _actor_kernel(x_ref, w1_ref, b1_ref, w2_ref, b2_ref, wh_ref, bh_ref,
                  out_ref):
    # bf16 operands, f32 accumulation. Elementwise epilogue stays f32.
    x = x_ref[...].astype(jnp.bfloat16)

    h1 = jnp.dot(x, w1_ref[...], preferred_element_type=jnp.float32) + b1_ref[...]
    h1 = jnp.maximum(h1, 0.0).astype(jnp.bfloat16)

    h2 = jnp.dot(h1, w2_ref[...], preferred_element_type=jnp.float32) + b2_ref[...]
    h2 = jnp.maximum(h2, 0.0).astype(jnp.bfloat16)

    heads = jnp.dot(h2, wh_ref[...], preferred_element_type=jnp.float32) + bh_ref[...]
    out_ref[...] = heads.astype(out_ref.dtype)


# --------------------------------------------------------------------------
# One-time parameter prep (hoisted out of the per-step forward path)
# --------------------------------------------------------------------------
def prepare_params(params):
    """Pad hidden widths to 128 lanes, fuse mu/log_sigma heads, cast to bf16.

    Returns (w1p, b1p, w2p, b2p, wh, bh, action_size).
    Call once; reuse the result for every actor_forward() call.
    """
    w1, b1, w2, b2, wmu, bmu, wls, bls = params
    input_size, h1 = w1.shape
    _, h2 = w2.shape
    _, action_size = wmu.shape

    h1p = _round_up(h1, LANE)
    h2p = _round_up(h2, LANE)
    out_lanes = max(LANE, _round_up(2 * action_size, LANE))

    w1p = jnp.zeros((input_size, h1p), jnp.float32).at[:, :h1].set(w1)
    b1p = jnp.zeros((1, h1p), jnp.float32).at[:, :h1].set(b1)

    w2p = jnp.zeros((h1p, h2p), jnp.float32).at[:h1, :h2].set(w2)
    b2p = jnp.zeros((1, h2p), jnp.float32).at[:, :h2].set(b2)

    wh = jnp.zeros((h2p, out_lanes), jnp.float32)
    wh = wh.at[:h2, :action_size].set(wmu)
    wh = wh.at[:h2, action_size:2 * action_size].set(wls)
    bh = jnp.zeros((1, out_lanes), jnp.float32)
    bh = bh.at[:, :action_size].set(bmu)
    bh = bh.at[:, action_size:2 * action_size].set(bls)

    # Matmul operands in bf16 (MXU-native); biases stay f32.
    return (w1p.astype(jnp.bfloat16), b1p,
            w2p.astype(jnp.bfloat16), b2p,
            wh.astype(jnp.bfloat16), bh,
            action_size)


def _tiling(batch, block_batch):
    """Pick (tile_rows, padded_batch). Tile rows are always a multiple of 8."""
    block_batch = _round_up(max(int(block_batch), 8), 8)
    if batch <= block_batch:
        tb = _round_up(batch, 8)
        return tb, tb
    n_tiles = -(-batch // block_batch)
    if n_tiles % 2:
        # Keep the parallel grid count even so both v7x TensorCores stay busy
        # (harmless on single-core v5e/v6e).
        n_tiles += 1
    tb = _round_up(-(-batch // n_tiles), 8)
    return tb, tb * n_tiles


# --------------------------------------------------------------------------
# Forward wrapper
# --------------------------------------------------------------------------
def actor_forward(observation, prepared_params, *, block_batch=2048):
    """Fused Pallas forward pass.

    observation: [B, input_size] float32.
    prepared_params: output of prepare_params().
    Returns (mu, log_sigma), each [B, action_size] float32.
    """
    w1p, b1p, w2p, b2p, wh, bh, action_size = prepared_params
    batch, input_size = observation.shape
    out_lanes = wh.shape[1]

    tb, batch_padded = _tiling(batch, block_batch)
    obs = observation
    if batch_padded != batch:
        obs = jnp.pad(observation, ((0, batch_padded - batch), (0, 0)))

    grid = (batch_padded // tb,)

    out = pl.pallas_call(
        _actor_kernel,
        out_shape=jax.ShapeDtypeStruct((batch_padded, out_lanes), jnp.float32),
        grid=grid,
        in_specs=[
            # obs tile pipelines over the batch grid axis
            pl.BlockSpec((tb, input_size), lambda i: (i, 0)),
            # weights / biases: same block every iteration -> VMEM-resident
            pl.BlockSpec(w1p.shape, lambda i: (0, 0)),
            pl.BlockSpec(b1p.shape, lambda i: (0, 0)),
            pl.BlockSpec(w2p.shape, lambda i: (0, 0)),
            pl.BlockSpec(b2p.shape, lambda i: (0, 0)),
            pl.BlockSpec(wh.shape, lambda i: (0, 0)),
            pl.BlockSpec(bh.shape, lambda i: (0, 0)),
        ],
        out_specs=pl.BlockSpec((tb, out_lanes), lambda i: (i, 0)),
        compiler_params=pltpu.CompilerParams(
            dimension_semantics=("parallel",)),
    )(obs, w1p, b1p, w2p, b2p, wh, bh)

    mu = out[:batch, :action_size]
    # Clamp applied on the tiny [B, action_size] slice in the wrapper
    # (moved out of the per-tile kernel epilogue).
    log_sigma = jnp.clip(out[:batch, action_size:2 * action_size],
                         MIN_LOG_SIGMA, MAX_LOG_SIGMA)
    return mu, log_sigma


# --------------------------------------------------------------------------
# Parameter init + references
# --------------------------------------------------------------------------
def init_params(key, input_size, hidden_layer_sizes, action_size):
    """Deterministic parameter init mirroring nn.Linear shapes.

    Weights are stored transposed vs PyTorch ([in, out] instead of [out, in])
    so the kernel can compute x @ W directly.
    """
    h1, h2 = hidden_layer_sizes
    keys = jax.random.split(key, 8)

    def linear(kw, kb, fan_in, fan_out):
        bound = 1.0 / jnp.sqrt(jnp.float32(fan_in))
        w = jax.random.uniform(kw, (fan_in, fan_out), jnp.float32, -bound, bound)
        b = jax.random.uniform(kb, (1, fan_out), jnp.float32, -bound, bound)
        return w, b

    w1, b1 = linear(keys[0], keys[1], input_size, h1)
    w2, b2 = linear(keys[2], keys[3], h1, h2)
    wmu, bmu = linear(keys[4], keys[5], h2, action_size)
    wls, bls = linear(keys[6], keys[7], h2, action_size)
    return (w1, b1, w2, b2, wmu, bmu, wls, bls)


def actor_forward_ref_f32(observation, params):
    """Full-precision JAX reference (semantic check, loose tolerance)."""
    w1, b1, w2, b2, wmu, bmu, wls, bls = params
    h = jnp.maximum(observation @ w1 + b1, 0.0)
    h = jnp.maximum(h @ w2 + b2, 0.0)
    mu = h @ wmu + bmu
    ls = jnp.clip(h @ wls + bls, MIN_LOG_SIGMA, MAX_LOG_SIGMA)
    return mu, ls


def actor_forward_ref_bf16(observation, params):
    """Reference with the same bf16 operand / f32 accumulate recipe as the kernel."""
    w1, b1, w2, b2, wmu, bmu, wls, bls = params
    bf = jnp.bfloat16
    x = observation.astype(bf)
    h = jnp.dot(x, w1.astype(bf), preferred_element_type=jnp.float32) + b1
    h = jnp.maximum(h, 0.0).astype(bf)
    h = jnp.dot(h, w2.astype(bf), preferred_element_type=jnp.float32) + b2
    h = jnp.maximum(h, 0.0).astype(bf)
    mu = jnp.dot(h, wmu.astype(bf), preferred_element_type=jnp.float32) + bmu
    ls = jnp.dot(h, wls.astype(bf), preferred_element_type=jnp.float32) + bls
    ls = jnp.clip(ls, MIN_LOG_SIGMA, MAX_LOG_SIGMA)
    return mu, ls


if __name__ == "__main__":
    # Small SAC-like problem: obs dim 16, two hidden layers of 32, 8 actions.
    # batch=300 is deliberately NOT a multiple of 8 or 128 to exercise the
    # row-padding path (single tile) and the even-grid multi-tile path.
    input_size = 16
    hidden_layer_sizes = (32, 32)
    action_size = 8
    batch = 300

    key = jax.random.PRNGKey(0)
    key_obs, key_params = jax.random.split(key)
    observation = jax.random.normal(key_obs, (batch, input_size), dtype=jnp.float32)
    params = init_params(key_params, input_size, hidden_layer_sizes, action_size)

    # One-time prep (hoisted out of the forward path).
    prepared = prepare_params(params)

    # Path 1: single-tile (default large block_batch).
    mu, log_sigma = actor_forward(observation, prepared)
    # Path 2: multi-tile grid with even tile count (v7x core balance).
    mu2, log_sigma2 = actor_forward(observation, prepared, block_batch=128)
    jax.block_until_ready((mu, log_sigma, mu2, log_sigma2))

    mu_bref, ls_bref = actor_forward_ref_bf16(observation, params)
    mu_fref, ls_fref = actor_forward_ref_f32(observation, params)

    assert mu.shape == (batch, action_size)
    assert log_sigma.shape == (batch, action_size)

    # Tight check vs a reference using the identical bf16/f32-acc recipe.
    assert jnp.allclose(mu, mu_bref, atol=2e-3, rtol=2e-3)
    assert jnp.allclose(log_sigma, ls_bref, atol=2e-3, rtol=2e-3)
    # Tiling must not change results.
    assert jnp.allclose(mu, mu2, atol=1e-5, rtol=1e-5)
    assert jnp.allclose(log_sigma, log_sigma2, atol=1e-5, rtol=1e-5)
    # Loose semantic check vs full f32 reference.
    assert jnp.allclose(mu, mu_fref, atol=5e-2, rtol=5e-2)
    assert jnp.allclose(log_sigma, ls_fref, atol=5e-2, rtol=5e-2)
    # Clamp bounds respected.
    assert bool(jnp.all(log_sigma <= MAX_LOG_SIGMA))
    assert bool(jnp.all(log_sigma >= MIN_LOG_SIGMA))

    print("KERNEL_OK")
</pallas_src>

<mosaic_0001>
module attributes {stable_mosaic.version = 11 : i64} {
  func.func @_actor_kernel(%arg0: i32, %arg1: memref<304x16xf32, #tpu.memory_space<vmem>>, %arg2: memref<16x128xbf16, #tpu.memory_space<vmem>>, %arg3: memref<1x128xf32, #tpu.memory_space<vmem>>, %arg4: memref<128x128xbf16, #tpu.memory_space<vmem>>, %arg5: memref<1x128xf32, #tpu.memory_space<vmem>>, %arg6: memref<128x128xbf16, #tpu.memory_space<vmem>>, %arg7: memref<1x128xf32, #tpu.memory_space<vmem>>, %arg8: memref<304x128xf32, #tpu.memory_space<vmem>>) attributes {dimension_semantics = [#tpu.dimension_semantics<parallel>], iteration_bounds = array<i64: 1>, scalar_prefetch = 0 : i64, scratch_operands = 0 : i64, tpu.core_type = #tpu.core_type<tc>, window_params = [{transform_indices = @transform_0, window_bounds = array<i64: 304, 16>}, {pipeline_mode = #tpu.pipeline_mode<synchronous>, transform_indices = @transform_1, window_bounds = array<i64: 16, 128>}, {pipeline_mode = #tpu.pipeline_mode<synchronous>, transform_indices = @transform_2, window_bounds = array<i64: 1, 128>}, {pipeline_mode = #tpu.pipeline_mode<synchronous>, transform_indices = @transform_3, window_bounds = array<i64: 128, 128>}, {pipeline_mode = #tpu.pipeline_mode<synchronous>, transform_indices = @transform_4, window_bounds = array<i64: 1, 128>}, {pipeline_mode = #tpu.pipeline_mode<synchronous>, transform_indices = @transform_5, window_bounds = array<i64: 128, 128>}, {pipeline_mode = #tpu.pipeline_mode<synchronous>, transform_indices = @transform_6, window_bounds = array<i64: 1, 128>}, {transform_indices = @transform_7, window_bounds = array<i64: 304, 128>}]} {
    %c0 = arith.constant 0 : index
    %c0_0 = arith.constant 0 : index
    %0 = vector.load %arg1[%c0, %c0_0] : memref<304x16xf32, #tpu.memory_space<vmem>>, vector<304x16xf32>
    %1 = arith.truncf %0 : vector<304x16xf32> to vector<304x16xbf16>
    %c0_1 = arith.constant 0 : index
    %c0_2 = arith.constant 0 : index
    %2 = vector.load %arg2[%c0_1, %c0_2] : memref<16x128xbf16, #tpu.memory_space<vmem>>, vector<16x128xbf16>
    %cst = arith.constant dense<0.000000e+00> : vector<304x128xf32>
    %3 = tpu.matmul %1, %2, %cst {dimension_numbers = #tpu.dot_dimension_numbers<[1], [0], [0], [1], [0, 0, 1, 1], [], []>} : vector<304x16xbf16>, vector<16x128xbf16>, vector<304x128xf32> -> vector<304x128xf32>
    %c0_3 = arith.constant 0 : index
    %c0_4 = arith.constant 0 : index
    %4 = vector.load %arg3[%c0_3, %c0_4] : memref<1x128xf32, #tpu.memory_space<vmem>>, vector<1x128xf32>
    %5 = vector.broadcast %4 : vector<1x128xf32> to vector<304x128xf32>
    %6 = arith.addf %3, %5 : vector<304x128xf32>
    %cst_5 = arith.constant 0.000000e+00 : f32
    %7 = vector.broadcast %cst_5 : f32 to vector<304x128xf32>
    %8 = arith.maximumf %6, %7 : vector<304x128xf32>
    %9 = arith.truncf %8 : vector<304x128xf32> to vector<304x128xbf16>
    %c0_6 = arith.constant 0 : index
    %c0_7 = arith.constant 0 : index
    %10 = vector.load %arg4[%c0_6, %c0_7] : memref<128x128xbf16, #tpu.memory_space<vmem>>, vector<128x128xbf16>
    %cst_8 = arith.constant dense<0.000000e+00> : vector<304x128xf32>
    %11 = tpu.matmul %9, %10, %cst_8 {dimension_numbers = #tpu.dot_dimension_numbers<[1], [0], [0], [1], [0, 0, 1, 1], [], []>} : vector<304x128xbf16>, vector<128x128xbf16>, vector<304x128xf32> -> vector<304x128xf32>
    %c0_9 = arith.constant 0 : index
    %c0_10 = arith.constant 0 : index
    %12 = vector.load %arg5[%c0_9, %c0_10] : memref<1x128xf32, #tpu.memory_space<vmem>>, vector<1x128xf32>
    %13 = vector.broadcast %12 : vector<1x128xf32> to vector<304x128xf32>
    %14 = arith.addf %11, %13 : vector<304x128xf32>
    %cst_11 = arith.constant 0.000000e+00 : f32
    %15 = vector.broadcast %cst_11 : f32 to vector<304x128xf32>
    %16 = arith.maximumf %14, %15 : vector<304x128xf32>
    %17 = arith.truncf %16 : vector<304x128xf32> to vector<304x128xbf16>
    %c0_12 = arith.constant 0 : index
    %c0_13 = arith.constant 0 : index
    %18 = vector.load %arg6[%c0_12, %c0_13] : memref<128x128xbf16, #tpu.memory_space<vmem>>, vector<128x128xbf16>
    %cst_14 = arith.constant dense<0.000000e+00> : vector<304x128xf32>
    %19 = tpu.matmul %17, %18, %cst_14 {dimension_numbers = #tpu.dot_dimension_numbers<[1], [0], [0], [1], [0, 0, 1, 1], [], []>} : vector<304x128xbf16>, vector<128x128xbf16>, vector<304x128xf32> -> vector<304x128xf32>
    %c0_15 = arith.constant 0 : index
    %c0_16 = arith.constant 0 : index
    %20 = vector.load %arg7[%c0_15, %c0_16] : memref<1x128xf32, #tpu.memory_space<vmem>>, vector<1x128xf32>
    %21 = vector.broadcast %20 : vector<1x128xf32> to vector<304x128xf32>
    %22 = arith.addf %19, %21 : vector<304x128xf32>
    %c0_17 = arith.constant 0 : index
    %c0_18 = arith.constant 0 : index
    %23 = vector.load %arg8[%c0_17, %c0_18] : memref<304x128xf32, #tpu.memory_space<vmem>>, vector<304x128xf32>
    tpu.vector_store %arg8[%c0_17, %c0_18], %22 {strides = array<i32>} : memref<304x128xf32, #tpu.memory_space<vmem>>, vector<304x128xf32>,
    return
  }
  func.func @transform_0(%arg0: i32) -> (i32, i32) {
    %c0_i32 = arith.constant 0 : i32
    %c0_i32_0 = arith.constant 0 : i32
    return %arg0, %c0_i32 : i32, i32
  }
  func.func @transform_1(%arg0: i32) -> (i32, i32) {
    %c0_i32 = arith.constant 0 : i32
    %c0_i32_0 = arith.constant 0 : i32
    %c0_i32_1 = arith.constant 0 : i32
    return %c0_i32, %c0_i32_0 : i32, i32
  }
  func.func @transform_2(%arg0: i32) -> (i32, i32) {
    %c0_i32 = arith.constant 0 : i32
    %c0_i32_0 = arith.constant 0 : i32
    %c0_i32_1 = arith.constant 0 : i32
    return %c0_i32, %c0_i32_0 : i32, i32
  }
  func.func @transform_3(%arg0: i32) -> (i32, i32) {
    %c0_i32 = arith.constant 0 : i32
    %c0_i32_0 = arith.constant 0 : i32
    %c0_i32_1 = arith.constant 0 : i32
    return %c0_i32, %c0_i32_0 : i32, i32
  }
  func.func @transform_4(%arg0: i32) -> (i32, i32) {
    %c0_i32 = arith.constant 0 : i32
    %c0_i32_0 = arith.constant 0 : i32
    %c0_i32_1 = arith.constant 0 : i32
    return %c0_i32, %c0_i32_0 : i32, i32
  }
  func.func @transform_5(%arg0: i32) -> (i32, i32) {
    %c0_i32 = arith.constant 0 : i32
    %c0_i32_0 = arith.constant 0 : i32
    %c0_i32_1 = arith.constant 0 : i32
    return %c0_i32, %c0_i32_0 : i32, i32
  }
  func.func @transform_6(%arg0: i32) -> (i32, i32) {
    %c0_i32 = arith.constant 0 : i32
    %c0_i32_0 = arith.constant 0 : i32
    %c0_i32_1 = arith.constant 0 : i32
    return %c0_i32, %c0_i32_0 : i32, i32
  }
  func.func @transform_7(%arg0: i32) -> (i32, i32) {
    %c0_i32 = arith.constant 0 : i32
    %c0_i32_0 = arith.constant 0 : i32
    return %arg0, %c0_i32 : i32, i32
  }
}

</mosaic_0001>

<bundles_post_ra>
// kernel: tpu_custom_call.1
= control target key start
LH: loop header
LB: loop body
LE: loop exit
PB: predicated region body
PF: predicated region fallthrough
CT: control target
= control target key end

     0   :  { %v1446_v1 = vmov 0.0   ;;  %vm1447_vm0 = vmmov 0   ;;  %vm100_vm1 = vcmask 130048   ;;  %s1966_s0 = inlined_call_operand.vmem [shape: f32[304,16], index: 0, kind: input, shape index: {}]   ;;  %s1967_s1 = inlined_call_operand.vmem [shape: bf16[16,128], index: 1, kind: input, shape index: {}]   ;;  %s1968_s2 = inlined_call_operand.vmem [shape: f32[1,128], index: 2, kind: input, shape index: {}]   ;;  %s1969_s3 = inlined_call_operand.vmem [shape: bf16[128,128], index: 3, kind: input, shape index: {}]   ;;  %s1970_s4 = inlined_call_operand.vmem [shape: f32[1,128], index: 4, kind: input, shape index: {}]   ;;  %s1971_s5 = inlined_call_operand.vmem [shape: bf16[128,128], index: 5, kind: input, shape index: {}]   ;;  %s1972_s6 = inlined_call_operand.vmem [shape: f32[1,128], index: 6, kind: input, shape index: {}]   ;;  %s1973_s7 = inlined_call_operand.hbm [shape: f32[304,128], index: 7, kind: output, shape index: {}]  }
   0x1   :  { %v1405_v0 = vld [vmem:[%s1967_s1] sm:$0xff]   ;;  %1136 = vmatprep.subr.bf16.mxu0 %v1446_v1  ;;  %v29_v3 = vld [vmem:[%s1966_s0 + $0x8] sm:$0xff]  ;;  %1398 = vmatprep.subr.bf16.mxu1 %v1446_v1  ;;  %v30_v5 = vld [vmem:[%s1966_s0 + $0x10] sm:$0xff] }
   0x2   :  { %v28_v2 = vld [vmem:[%s1966_s0] sm:$0xff]  ;;  %1137 = vmatpush3.bf16.msra.mxu0 %v1405_v0  ;;  %1138 = vmatprep.mubr.msk.bf16.mxu0 %vm1447_vm0, %v1446_v1  ;;  %v31_v6 = vld [vmem:[%s1966_s0 + $0x18] sm:$0xff]  ;;  %v49_v8 = vld [vmem:[%s1966_s0 + $0xa8] sm:$0xff] }
   0x3   :  { %v66_v4 = vpack.c.bf16 %v29_v3, %v28_v2  ;;  %1399 = vmatpush3.bf16.msra.mxu1 %v1405_v0  ;;  %1178 = vmatprep.mubr.msk.bf16.mxu1 %vm1447_vm0, %v1446_v1  ;;  %v48_v7 = vld [vmem:[%s1966_s0 + $0xa0] sm:$0xff]  ;;  %v67_v9 = vpack.c.bf16 %v31_v6, %v30_v5  ;;  %v50_v11 = vld [vmem:[%s1966_s0 + $0xb0] sm:$0xff]  ;;  %v51_v12 = vld [vmem:[%s1966_s0 + $0xb8] sm:$0xff] }
   0x4   :  { %1214 = vmatprep.subr.bf16.mxu1 %v1446_v1  ;;  %1306 = vmatprep.subr.bf16.mxu0 %v1446_v1  ;;  %v76_v10 = vpack.c.bf16 %v49_v8, %v48_v7  ;;  %v32_v13 = vld [vmem:[%s1966_s0 + $0x20] sm:$0xff]  ;;  %v33_v14 = vld [vmem:[%s1966_s0 + $0x28] sm:$0xff]  ;;  %v77_v16 = vpack.c.bf16 %v51_v12, %v50_v11  ;;  %v34_v20 = vld [vmem:[%s1966_s0 + $0x30] sm:$0xff] }
   0x5   :  { %1139 = vmatmul.mubr.msk.bf16.vlgmr.msra.gmra.mrb[0].mxu0 %vm100_vm1, %v66_v4  ;;  %v1406_v15 = vld [vmem:[%s1969_s3] sm:$0xff]   ;;  %v1407_v17 = vld [vmem:[%s1969_s3 + $0x8] sm:$0xff]   ;;  %v68_v18 = vpack.c.bf16 %v33_v14, %v32_v13  ;;  %v35_v21 = vld [vmem:[%s1966_s0 + $0x38] sm:$0xff] }
   0x6   :  { %1142 = vmatprep.mubr.msk.bf16.mxu0 %vm1447_vm0, %v1446_v1  ;;  %1179 = vmatmul.mubr.msk.bf16.vlgmr.msra.gmra.mrb[0].mxu1 %vm100_vm1, %v76_v10  ;;  %v52_v19 = vld [vmem:[%s1966_s0 + $0xc0] sm:$0xff]  ;;  %v53_v22 = vld [vmem:[%s1966_s0 + $0xc8] sm:$0xff]  ;;  %v1408_v23 = vld [vmem:[%s1969_s3 + $0x10] sm:$0xff]   ;;  %v69_v26 = vpack.c.bf16 %v35_v21, %v34_v20 }
   0x7   :  { %1182 = vmatprep.mubr.msk.bf16.mxu1 %vm1447_vm0, %v1446_v1  ;;  %1215 = vmatpush3.bf16.msra.mxu1 %v1406_v15  ;;  %v1409_v24 = vld [vmem:[%s1969_s3 + $0x18] sm:$0xff]   ;;  %v78_v25 = vpack.c.bf16 %v53_v22, %v52_v19 }
   0x8   :  { %1216 = vmatprep.subr.bf16.mxu1 %v1446_v1 }
   0xb   :  { %1217 = vmatpush3.bf16.msra.mxu1 %v1407_v17 }
   0xc   :  { %1218 = vmatprep.subr.bf16.mxu1 %v1446_v1 }
   0xd   :  { %1143 = vmatmul.mubr.msk.bf16.gmra.mrb[4].mxu0 %vm100_vm1, %v67_v9 }
   0xe   :  { %1146 = vmatprep.mubr.msk.bf16.mxu0 %vm1447_vm0, %v1446_v1  ;;  %1183 = vmatmul.mubr.msk.bf16.gmra.mrb[4].mxu1 %vm100_vm1, %v77_v16 }
   0xf   :  { %1186 = vmatprep.mubr.msk.bf16.mxu1 %vm1447_vm0, %v1446_v1  ;;  %1219 = vmatpush3.bf16.msra.mxu1 %v1408_v23 }
  0x10   :  { %1220 = vmatprep.subr.bf16.mxu1 %v1446_v1 }
  0x15   :  { %1147 = vmatmul.mubr.msk.bf16.gmra.mrb[8].mxu0 %vm100_vm1, %v68_v18 }
  0x16   :  { %1150 = vmatprep.mubr.msk.bf16.mxu0 %vm1447_vm0, %v1446_v1  ;;  %1187 = vmatmul.mubr.msk.bf16.gmra.mrb[8].mxu1 %vm100_vm1, %v78_v25 }
  0x17   :  { %12 = vsyncpa [#allocation3], 0  ;;  %1190 = vmatprep.mubr.msk.bf16.mxu1 %vm1447_vm0, %v1446_v1  ;;  %v54_v27 = vld [vmem:[%s1966_s0 + $0xd0] sm:$0xff]  ;;  %v55_v28 = vld [vmem:[%s1966_s0 + $0xd8] sm:$0xff]  ;;  %1221 = vmatpush3.bf16.msra.mxu1 %v1409_v24 }
  0x18   :  { %v1410_v29 = vld [vmem:[%s1969_s3 + $0x20] sm:$0xff]   ;;  %1222 = vmatprep.subr.bf16.mxu1 %v1446_v1  ;;  %v37_v31 = vld [vmem:[%s1966_s0 + $0x48] sm:$0xff]  ;;  %v79_v32 = vpack.c.bf16 %v55_v28, %v54_v27  ;;  %v1412_v37 = vld [vmem:[%s1969_s3 + $0x30] sm:$0xff]  }
  0x19   :  { %v36_v30 = vld [vmem:[%s1966_s0 + $0x40] sm:$0xff]  ;;  %v1411_v33 = vld [vmem:[%s1969_s3 + $0x28] sm:$0xff]   ;;  %v38_v38 = vld [vmem:[%s1966_s0 + $0x50] sm:$0xff] }
  0x1a   :  { %v70_v34 = vpack.c.bf16 %v37_v31, %v36_v30  ;;  %v56_v35 = vld [vmem:[%s1966_s0 + $0xe0] sm:$0xff]  ;;  %v57_v36 = vld [vmem:[%s1966_s0 + $0xe8] sm:$0xff]  ;;  %v39_v39 = vld [vmem:[%s1966_s0 + $0x58] sm:$0xff] }
  0x1b   :  { %1223 = vmatpush3.bf16.msra.mxu1 %v1410_v29  ;;  %v80_v40 = vpack.c.bf16 %v57_v36, %v56_v35  ;;  %v71_v41 = vpack.c.bf16 %v39_v39, %v38_v38  ;;  %v58_v42 = vld [vmem:[%s1966_s0 + $0xf0] sm:$0xff]  ;;  %v59_v43 = vld [vmem:[%s1966_s0 + $0xf8] sm:$0xff]  ;;  %v40_v44 = vld [vmem:[%s1966_s0 + $0x60] sm:$0xff] }
  0x1c   :  { %1224 = vmatprep.subr.bf16.mxu1 %v1446_v1  ;;  %v41_v45 = vld [vmem:[%s1966_s0 + $0x68] sm:$0xff]  ;;  %v81_v46 = vpack.c.bf16 %v59_v43, %v58_v42  ;;  %v60_v48 = vld [vmem:[%s1966_s0 + $0x100] sm:$0xff]  ;;  %v42_v50 = vld [vmem:[%s1966_s0 + $0x70] sm:$0xff] }
  0x1d   :  { %1151 = vmatmul.mubr.msk.bf16.gmra.mrb[12].mxu0 %vm100_vm1, %v69_v26  ;;  %v72_v47 = vpack.c.bf16 %v41_v45, %v40_v44  ;;  %v61_v49 = vld [vmem:[%s1966_s0 + $0x108] sm:$0xff]  ;;  %v43_v51 = vld [vmem:[%s1966_s0 + $0x78] sm:$0xff]  ;;  %v62_v54 = vld [vmem:[%s1966_s0 + $0x110] sm:$0xff] }
  0x1e   :  { %1154 = vmatprep.mubr.msk.bf16.mxu0 %vm1447_vm0, %v1446_v1  ;;  %1191 = vmatmul.mubr.msk.bf16.gmra.mrb[12].mxu1 %vm100_vm1, %v79_v32  ;;  %v82_v52 = vpack.c.bf16 %v61_v49, %v60_v48  ;;  %v73_v53 = vpack.c.bf16 %v43_v51, %v42_v50  ;;  %v63_v55 = vld [vmem:[%s1966_s0 + $0x118] sm:$0xff]  ;;  %v44_v56 = vld [vmem:[%s1966_s0 + $0x80] sm:$0xff]  ;;  %v45_v57 = vld [vmem:[%s1966_s0 + $0x88] sm:$0xff] }
  0x1f   :  { %1194 = vmatprep.mubr.msk.bf16.mxu1 %vm1447_vm0, %v1446_v1  ;;  %1225 = vmatpush3.bf16.msra.mxu1 %v1411_v33  ;;  %v83_v58 = vpack.c.bf16 %v63_v55, %v62_v54  ;;  %v74_v59 = vpack.c.bf16 %v45_v57, %v44_v56  ;;  %v64_v60 = vld [vmem:[%s1966_s0 + $0x120] sm:$0xff]  ;;  %v65_v61 = vld [vmem:[%s1966_s0 + $0x128] sm:$0xff]  ;;  %v46_v62 = vld [vmem:[%s1966_s0 + $0x90] sm:$0xff] }
  0x20   :  { %1226 = vmatprep.subr.bf16.mxu1 %v1446_v1  ;;  %v47_v63 = vld [vmem:[%s1966_s0 + $0x98] sm:$0xff]  ;;  %v84_v0 = vpack.c.bf16 %v65_v61, %v64_v60  ;;  %v1707_v4 = vld [vmem:[%s1968_s2] ss:$0 sm:$0xff]  ;;  %v1415_v61 = vld [vmem:[%s1971_s5 + $0x8] sm:$0xff]  }
  0x21   :  { %v75_v2 = vpack.c.bf16 %v47_v63, %v46_v62  ;;  %v1413_v3 = vld [vmem:[%s1969_s3 + $0x38] sm:$0xff]   ;;  %v1414_v42 = vld [vmem:[%s1971_s5] sm:$0xff]  }
  0x22   :  { %1307 = vmatpush3.bf16.msra.mxu0 %v1414_v42 }
  0x23   :  { %1227 = vmatpush3.bf16.msra.mxu1 %v1412_v37  ;;  %1308 = vmatprep.subr.bf16.mxu0 %v1446_v1 }
  0x24   :  { %1228 = vmatprep.subr.bf16.mxu1 %v1446_v1 }
  0x25   :  { %1155 = vmatmul.mubr.msk.bf16.gmra.mrb[16].mxu0 %vm100_vm1, %v70_v34 }
  0x26   :  { %1158 = vmatprep.mubr.msk.bf16.mxu0 %vm1447_vm0, %v1446_v1  ;;  %1195 = vmatmul.mubr.msk.bf16.gmra.mrb[16].mxu1 %vm100_vm1, %v80_v40 }
  0x27   :  { %1198 = vmatprep.mubr.msk.bf16.mxu1 %vm1447_vm0, %v1446_v1  ;;  %1229 = vmatpush3.bf16.msra.mxu1 %v1413_v3  ;;  %v1416_v3 = vld [vmem:[%s1971_s5 + $0x10] sm:$0xff]  }
  0x28   :  { %1309 = vmatpush3.bf16.msra.mxu0 %v1415_v61 }
  0x29   :  { %1310 = vmatprep.subr.bf16.mxu0 %v1446_v1 }
  0x2c   :  { %1311 = vmatpush3.bf16.msra.mxu0 %v1416_v3 }
  0x2d   :  { %1159 = vmatmul.mubr.msk.bf16.gmra.mrb[20].mxu0 %vm100_vm1, %v71_v41  ;;  %1312 = vmatprep.subr.bf16.mxu0 %v1446_v1 }
  0x2e   :  { %1162 = vmatprep.mubr.msk.bf16.mxu0 %vm1447_vm0, %v1446_v1  ;;  %1199 = vmatmul.mubr.msk.bf16.gmra.mrb[20].mxu1 %vm100_vm1, %v81_v46 }
  0x2f   :  { %1202 = vmatprep.mubr.msk.bf16.mxu1 %vm1447_vm0, %v1446_v1 }
  0x35   :  { %1163 = vmatmul.mubr.msk.bf16.gmra.mrb[24].mxu0 %vm100_vm1, %v72_v47 }
  0x36   :  { %1166 = vmatprep.mubr.msk.bf16.mxu0 %vm1447_vm0, %v1446_v1  ;;  %1203 = vmatmul.mubr.msk.bf16.gmra.mrb[24].mxu1 %vm100_vm1, %v82_v52 }
  0x37   :  { %1206 = vmatprep.mubr.msk.bf16.mxu1 %vm1447_vm0, %v1446_v1 }
  0x3d   :  { %1167 = vmatmul.mubr.msk.bf16.gmra.mrb[28].mxu0 %vm100_vm1, %v73_v53 }
  0x3e   :  { %1170 = vmatprep.mubr.msk.bf16.mxu0 %vm1447_vm0, %v1446_v1  ;;  %1207 = vmatmul.mubr.msk.bf16.gmra.mrb[28].mxu1 %vm100_vm1, %v83_v58 }
  0x3f   :  { %1210 = vmatprep.mubr.msk.bf16.mxu1 %vm1447_vm0, %v1446_v1 }
  0x45   :  { %1171 = vmatmul.mubr.msk.bf16.gmra.mrb[32].mxu0 %vm100_vm1, %v74_v59 }
  0x46   :  { %1174 = vmatprep.mubr.msk.bf16.mxu0 %vm1447_vm0, %v1446_v1  ;;  %1211 = vmatmul.mubr.msk.bf16.gmra.mrb[32].mxu1 %vm100_vm1, %v84_v0 }
  0x47   :  { %1230 = vmatprep.mubr.msk.bf16.mxu1 %vm1447_vm0, %v1446_v1 }
  0x4d   :  { %1175 = vmatmul.mubr.msk.bf16.gmra.mrb[36].mxu0 %vm100_vm1, %v75_v2 }
  0x4e   :  { %1322 = vmatprep.mubr.msk.bf16.mxu0 %vm1447_vm0, %v1446_v1 }
  0xd8   :  { %v192_v5 = vpop.f32.mrb[0].mxu0 }
  0xd9   :  { %v193_v6 = vadd.f32 %v1707_v4, %v192_v5  ;;  %v1140_v7 = vpop.f32.mrb[1].mxu0  ;;  %v272_v13 = vpop.f32.mrb[0].mxu1 }
  0xda   :  { %v195_v8 = vpop.f32.mrb[2].mxu0  ;;  %v273_v15 = vadd.f32 %v1707_v4, %v272_v13  ;;  %v1180_v16 = vpop.f32.mrb[1].mxu1 }
  0xdb   :  { %v196_v9 = vadd.f32 %v1707_v4, %v195_v8  ;;  %v1141_v10 = vpop.f32.mrb[3].mxu0  ;;  %v343_v11 = vmax.f32 %v193_v6, 0.0  ;;  %v275_v18 = vpop.f32.mrb[2].mxu1 }
  0xdc   :  { %v363_v21 = vmax.f32 %v273_v15, 0.0  ;;  %v276_v22 = vadd.f32 %v1707_v4, %v275_v18  ;;  %v1181_v23 = vpop.f32.mrb[3].mxu1 }
  0xdd   :  { %v344_v12 = vmax.f32 %v196_v9, 0.0 }
  0xde   :  { %v364_v27 = vmax.f32 %v276_v22, 0.0 }
  0xdf   :  { %v381_v14 = vpack.c.bf16 %v344_v12, %v343_v11  ;;  %v1417_v12 = vld [vmem:[%s1971_s5 + $0x18] sm:$0xff]  }
  0xe0   :  { %v200_v17 = vpop.f32.mrb[4].mxu0  ;;  %v1717_v30 = vpack.c.bf16 %v364_v27, %v363_v21  ;;  %1313 = vmatpush3.bf16.msra.mxu0 %v1417_v12 }
  0xe1   :  { %v201_v19 = vadd.f32 %v1707_v4, %v200_v17  ;;  %v1144_v20 = vpop.f32.mrb[5].mxu0  ;;  %1231 = vmatmul.mubr.bf16.vlgmr.msra.gmra.mrb[36].mxu1 %v381_v14  ;;  %v280_v31 = vpop.f32.mrb[4].mxu1  ;;  %1314 = vmatprep.subr.bf16.mxu0 %v1446_v1 }
  0xe2   :  { %v203_v24 = vpop.f32.mrb[6].mxu0  ;;  %1234 = vmatprep.mubr.msk.bf16.mxu1 %vm1447_vm0, %v1446_v1  ;;  %v281_v33 = vadd.f32 %v1707_v4, %v280_v31  ;;  %v1184_v34 = vpop.f32.mrb[5].mxu1 }
  0xe3   :  { %v204_v25 = vadd.f32 %v1707_v4, %v203_v24  ;;  %v1145_v26 = vpop.f32.mrb[7].mxu0  ;;  %v345_v28 = vmax.f32 %v201_v19, 0.0  ;;  %v283_v36 = vpop.f32.mrb[6].mxu1  ;;  %v1418_v24 = vld [vmem:[%s1971_s5 + $0x20] sm:$0xff]  }
  0xe4   :  { %v365_v39 = vmax.f32 %v281_v33, 0.0  ;;  %v284_v40 = vadd.f32 %v1707_v4, %v283_v36  ;;  %v1185_v41 = vpop.f32.mrb[7].mxu1  ;;  %1315 = vmatpush3.bf16.msra.mxu0 %v1418_v24  ;;  %v1419_v33 = vld [vmem:[%s1971_s5 + $0x28] sm:$0xff]  }
  0xe5   :  { %v346_v29 = vmax.f32 %v204_v25, 0.0  ;;  %1316 = vmatprep.subr.bf16.mxu0 %v1446_v1 }
  0xe6   :  { %v366_v46 = vmax.f32 %v284_v40, 0.0 }
  0xe7   :  { %v382_v32 = vpack.c.bf16 %v346_v29, %v345_v28 }
  0xe8   :  { %v208_v35 = vpop.f32.mrb[8].mxu0  ;;  %v1729_v49 = vpack.c.bf16 %v366_v46, %v365_v39  ;;  %1317 = vmatpush3.bf16.msra.mxu0 %v1419_v33 }
  0xe9   :  { %v209_v37 = vadd.f32 %v1707_v4, %v208_v35  ;;  %v1148_v38 = vpop.f32.mrb[9].mxu0  ;;  %1235 = vmatmul.mubr.bf16.gmra.mrb[40].mxu1 %v382_v32  ;;  %v288_v50 = vpop.f32.mrb[8].mxu1  ;;  %1318 = vmatprep.subr.bf16.mxu0 %v1446_v1 }
  0xea   :  { %v211_v43 = vpop.f32.mrb[10].mxu0  ;;  %1238 = vmatprep.mubr.msk.bf16.mxu1 %vm1447_vm0, %v1446_v1  ;;  %v289_v52 = vadd.f32 %v1707_v4, %v288_v50  ;;  %v1188_v53 = vpop.f32.mrb[9].mxu1 }
  0xeb   :  { %v212_v44 = vadd.f32 %v1707_v4, %v211_v43  ;;  %v1149_v45 = vpop.f32.mrb[11].mxu0  ;;  %v347_v47 = vmax.f32 %v209_v37, 0.0  ;;  %v291_v55 = vpop.f32.mrb[10].mxu1 }
  0xec   :  { %v367_v58 = vmax.f32 %v289_v52, 0.0  ;;  %v292_v59 = vadd.f32 %v1707_v4, %v291_v55  ;;  %v1189_v60 = vpop.f32.mrb[11].mxu1  ;;  %v1420_v45 = vld [vmem:[%s1971_s5 + $0x30] sm:$0xff]  }
  0xed   :  { %v348_v48 = vmax.f32 %v212_v44, 0.0  ;;  %1319 = vmatpush3.bf16.msra.mxu0 %v1420_v45 }
  0xee   :  { %v368_v2 = vmax.f32 %v292_v59, 0.0  ;;  %1320 = vmatprep.subr.bf16.mxu0 %v1446_v1 }
  0xef   :  { %v383_v51 = vpack.c.bf16 %v348_v48, %v347_v47 }
  0xf0   :  { %v216_v54 = vpop.f32.mrb[12].mxu0  ;;  %v1744_v7 = vpack.c.bf16 %v368_v2, %v367_v58 }
  0xf1   :  { %v217_v56 = vadd.f32 %v1707_v4, %v216_v54  ;;  %v1152_v57 = vpop.f32.mrb[13].mxu0  ;;  %1239 = vmatmul.mubr.bf16.gmra.mrb[44].mxu1 %v383_v51  ;;  %v296_v8 = vpop.f32.mrb[12].mxu1  ;;  %v1421_v54 = vld [vmem:[%s1971_s5 + $0x38] sm:$0xff]  }
  0xf2   :  { %v219_v62 = vpop.f32.mrb[14].mxu0  ;;  %1242 = vmatprep.mubr.msk.bf16.mxu1 %vm1447_vm0, %v1446_v1  ;;  %v297_v10 = vadd.f32 %v1707_v4, %v296_v8  ;;  %v1192_v11 = vpop.f32.mrb[13].mxu1  ;;  %1321 = vmatpush3.bf16.msra.mxu0 %v1421_v54 }
  0xf3   :  { %v220_v63 = vadd.f32 %v1707_v4, %v219_v62  ;;  %v1153_v0 = vpop.f32.mrb[15].mxu0  ;;  %v349_v5 = vmax.f32 %v217_v56, 0.0  ;;  %v299_v14 = vpop.f32.mrb[14].mxu1 }
  0xf4   :  { %v369_v17 = vmax.f32 %v297_v10, 0.0  ;;  %v300_v18 = vadd.f32 %v1707_v4, %v299_v14  ;;  %v1193_v19 = vpop.f32.mrb[15].mxu1 }
  0xf5   :  { %v350_v6 = vmax.f32 %v220_v63, 0.0 }
  0xf6   :  { %v370_v23 = vmax.f32 %v300_v18, 0.0 }
  0xf7   :  { %v384_v9 = vpack.c.bf16 %v350_v6, %v349_v5 }
  0xf8   :  { %v224_v13 = vpop.f32.mrb[16].mxu0  ;;  %v1760_v27 = vpack.c.bf16 %v370_v23, %v369_v17 }
  0xf9   :  { %v225_v15 = vadd.f32 %v1707_v4, %v224_v13  ;;  %v1156_v16 = vpop.f32.mrb[17].mxu0  ;;  %1243 = vmatmul.mubr.bf16.gmra.mrb[48].mxu1 %v384_v9  ;;  %v304_v28 = vpop.f32.mrb[16].mxu1 }
  0xfa   :  { %v227_v20 = vpop.f32.mrb[18].mxu0  ;;  %1246 = vmatprep.mubr.msk.bf16.mxu1 %vm1447_vm0, %v1446_v1  ;;  %v305_v31 = vadd.f32 %v1707_v4, %v304_v28  ;;  %v1196_v32 = vpop.f32.mrb[17].mxu1 }
  0xfb   :  { %v228_v21 = vadd.f32 %v1707_v4, %v227_v20  ;;  %v1157_v22 = vpop.f32.mrb[19].mxu0  ;;  %v351_v25 = vmax.f32 %v225_v15, 0.0  ;;  %v307_v35 = vpop.f32.mrb[18].mxu1 }
  0xfc   :  { %v371_v38 = vmax.f32 %v305_v31, 0.0  ;;  %v308_v39 = vadd.f32 %v1707_v4, %v307_v35  ;;  %v1197_v40 = vpop.f32.mrb[19].mxu1 }
  0xfd   :  { %v352_v26 = vmax.f32 %v228_v21, 0.0 }
  0xfe   :  { %v372_v44 = vmax.f32 %v308_v39, 0.0 }
  0xff   :  { %v385_v29 = vpack.c.bf16 %v352_v26, %v351_v25 }
 0x100   :  { %v232_v34 = vpop.f32.mrb[20].mxu0  ;;  %v1776_v48 = vpack.c.bf16 %v372_v44, %v371_v38 }
 0x101   :  { %v233_v36 = vadd.f32 %v1707_v4, %v232_v34  ;;  %v1160_v37 = vpop.f32.mrb[21].mxu0  ;;  %1247 = vmatmul.mubr.bf16.gmra.mrb[52].mxu1 %v385_v29  ;;  %v312_v50 = vpop.f32.mrb[20].mxu1 }
 0x102   :  { %v235_v41 = vpop.f32.mrb[22].mxu0  ;;  %1250 = vmatprep.mubr.msk.bf16.mxu1 %vm1447_vm0, %v1446_v1  ;;  %v313_v52 = vadd.f32 %v1707_v4, %v312_v50  ;;  %v1200_v53 = vpop.f32.mrb[21].mxu1 }
 0x103   :  { %v236_v42 = vadd.f32 %v1707_v4, %v235_v41  ;;  %v1161_v43 = vpop.f32.mrb[23].mxu0  ;;  %v353_v46 = vmax.f32 %v233_v36, 0.0  ;;  %v315_v56 = vpop.f32.mrb[22].mxu1 }
 0x104   :  { %v373_v59 = vmax.f32 %v313_v52, 0.0  ;;  %v316_v60 = vadd.f32 %v1707_v4, %v315_v56  ;;  %v1201_v61 = vpop.f32.mrb[23].mxu1 }
 0x105   :  { %v354_v47 = vmax.f32 %v236_v42, 0.0 }
 0x106   :  { %v374_v2 = vmax.f32 %v316_v60, 0.0 }
 0x107   :  { %v386_v51 = vpack.c.bf16 %v354_v47, %v353_v46 }
 0x108   :  { %v240_v55 = vpop.f32.mrb[24].mxu0  ;;  %v1788_v6 = vpack.c.bf16 %v374_v2, %v373_v59 }
 0x109   :  { %v241_v57 = vadd.f32 %v1707_v4, %v240_v55  ;;  %v1164_v58 = vpop.f32.mrb[25].mxu0  ;;  %1251 = vmatmul.mubr.bf16.gmra.mrb[56].mxu1 %v386_v51  ;;  %v320_v8 = vpop.f32.mrb[24].mxu1 }
 0x10a   :  { %v243_v62 = vpop.f32.mrb[26].mxu0  ;;  %1254 = vmatprep.mubr.msk.bf16.mxu1 %vm1447_vm0, %v1446_v1  ;;  %v321_v10 = vadd.f32 %v1707_v4, %v320_v8  ;;  %v1204_v11 = vpop.f32.mrb[25].mxu1 }
 0x10b   :  { %v244_v63 = vadd.f32 %v1707_v4, %v243_v62  ;;  %v1165_v0 = vpop.f32.mrb[27].mxu0  ;;  %v355_v3 = vmax.f32 %v241_v57, 0.0  ;;  %v323_v13 = vpop.f32.mrb[26].mxu1 }
 0x10c   :  { %v375_v16 = vmax.f32 %v321_v10, 0.0  ;;  %v324_v17 = vadd.f32 %v1707_v4, %v323_v13  ;;  %v1205_v18 = vpop.f32.mrb[27].mxu1 }
 0x10d   :  { %v356_v5 = vmax.f32 %v244_v63, 0.0 }
 0x10e   :  { %v376_v22 = vmax.f32 %v324_v17, 0.0 }
 0x10f   :  { %v387_v9 = vpack.c.bf16 %v356_v5, %v355_v3 }
 0x110   :  { %v248_v12 = vpop.f32.mrb[28].mxu0  ;;  %v397_v25 = vpack.c.bf16 %v376_v22, %v375_v16 }
 0x111   :  { %v249_v14 = vadd.f32 %v1707_v4, %v248_v12  ;;  %v1168_v15 = vpop.f32.mrb[29].mxu0  ;;  %1255 = vmatmul.mubr.bf16.gmra.mrb[60].mxu1 %v387_v9  ;;  %v328_v26 = vpop.f32.mrb[28].mxu1 }
 0x112   :  { %v251_v19 = vpop.f32.mrb[30].mxu0  ;;  %1258 = vmatprep.mubr.msk.bf16.mxu1 %vm1447_vm0, %v1446_v1  ;;  %v329_v29 = vadd.f32 %v1707_v4, %v328_v26  ;;  %v1208_v31 = vpop.f32.mrb[29].mxu1 }
 0x113   :  { %v252_v20 = vadd.f32 %v1707_v4, %v251_v19  ;;  %v1169_v21 = vpop.f32.mrb[31].mxu0  ;;  %v357_v23 = vmax.f32 %v249_v14, 0.0  ;;  %v331_v33 = vpop.f32.mrb[30].mxu1 }
 0x114   :  { %v377_v36 = vmax.f32 %v329_v29, 0.0  ;;  %v332_v37 = vadd.f32 %v1707_v4, %v331_v33  ;;  %v1209_v38 = vpop.f32.mrb[31].mxu1 }
 0x115   :  { %v358_v24 = vmax.f32 %v252_v20, 0.0 }
 0x116   :  { %v378_v42 = vmax.f32 %v332_v37, 0.0 }
 0x117   :  { %v388_v28 = vpack.c.bf16 %v358_v24, %v357_v23 }
 0x118   :  { %v256_v32 = vpop.f32.mrb[32].mxu0  ;;  %v398_v45 = vpack.c.bf16 %v378_v42, %v377_v36 }
 0x119   :  { %v257_v34 = vadd.f32 %v1707_v4, %v256_v32  ;;  %v1172_v35 = vpop.f32.mrb[33].mxu0  ;;  %1259 = vmatmul.mubr.bf16.gmra.mrb[64].mxu1 %v388_v28  ;;  %v336_v46 = vpop.f32.mrb[32].mxu1 }
 0x11a   :  { %v259_v39 = vpop.f32.mrb[34].mxu0  ;;  %1262 = vmatprep.mubr.msk.bf16.mxu1 %vm1447_vm0, %v1446_v1  ;;  %v337_v50 = vadd.f32 %v1707_v4, %v336_v46  ;;  %v1212_v51 = vpop.f32.mrb[33].mxu1 }
 0x11b   :  { %v260_v40 = vadd.f32 %v1707_v4, %v259_v39  ;;  %v1173_v41 = vpop.f32.mrb[35].mxu0  ;;  %v359_v43 = vmax.f32 %v257_v34, 0.0  ;;  %v339_v53 = vpop.f32.mrb[34].mxu1 }
 0x11c   :  { %v379_v56 = vmax.f32 %v337_v50, 0.0  ;;  %v340_v57 = vadd.f32 %v1707_v4, %v339_v53  ;;  %v1213_v58 = vpop.f32.mrb[35].mxu1 }
 0x11d   :  { %v360_v44 = vmax.f32 %v260_v40, 0.0 }
 0x11e   :  { %v380_v62 = vmax.f32 %v340_v57, 0.0 }
 0x11f   :  { %v389_v47 = vpack.c.bf16 %v360_v44, %v359_v43 }
 0x120   :  { %v264_v52 = vpop.f32.mrb[36].mxu0  ;;  %v399_v2 = vpack.c.bf16 %v380_v62, %v379_v56 }
 0x121   :  { %v265_v54 = vadd.f32 %v1707_v4, %v264_v52  ;;  %v1176_v55 = vpop.f32.mrb[37].mxu0  ;;  %1263 = vmatmul.mubr.bf16.gmra.mrb[68].mxu1 %v389_v47 }
 0x122   :  { %v267_v59 = vpop.f32.mrb[38].mxu0  ;;  %1266 = vmatprep.mubr.msk.bf16.mxu1 %vm1447_vm0, %v1446_v1 }
 0x123   :  { %v268_v60 = vadd.f32 %v1707_v4, %v267_v59  ;;  %v1177_v61 = vpop.f32.mrb[39].mxu0  ;;  %v361_v63 = vmax.f32 %v265_v54, 0.0  ;;  %v1835_v4 = vld [vmem:[%s1970_s4] ss:$0 sm:$0xff] }
 0x125   :  { %v362_v0 = vmax.f32 %v268_v60, 0.0 }
 0x127   :  { %v390_v3 = vpack.c.bf16 %v362_v0, %v361_v63 }
 0x129   :  { %1267 = vmatmul.mubr.bf16.gmra.mrb[72].mxu1 %v390_v3 }
 0x12a   :  { %1270 = vmatprep.mubr.msk.bf16.mxu1 %vm1447_vm0, %v1446_v1 }
 0x131   :  { %1271 = vmatmul.mubr.bf16.gmra.mrb[76].mxu1 %v1717_v30 }
 0x132   :  { %1274 = vmatprep.mubr.msk.bf16.mxu1 %vm1447_vm0, %v1446_v1 }
 0x139   :  { %1275 = vmatmul.mubr.bf16.gmra.mrb[80].mxu1 %v1729_v49 }
 0x13a   :  { %1278 = vmatprep.mubr.msk.bf16.mxu1 %vm1447_vm0, %v1446_v1 }
 0x141   :  { %1279 = vmatmul.mubr.bf16.gmra.mrb[84].mxu1 %v1744_v7 }
 0x142   :  { %1282 = vmatprep.mubr.msk.bf16.mxu1 %vm1447_vm0, %v1446_v1 }
 0x149   :  { %1283 = vmatmul.mubr.bf16.gmra.mrb[88].mxu1 %v1760_v27 }
 0x14a   :  { %1286 = vmatprep.mubr.msk.bf16.mxu1 %vm1447_vm0, %v1446_v1 }
 0x151   :  { %1287 = vmatmul.mubr.bf16.gmra.mrb[92].mxu1 %v1776_v48 }
 0x152   :  { %1290 = vmatprep.mubr.msk.bf16.mxu1 %vm1447_vm0, %v1446_v1 }
 0x159   :  { %1291 = vmatmul.mubr.bf16.gmra.mrb[96].mxu1 %v1788_v6 }
 0x15a   :  { %1294 = vmatprep.mubr.msk.bf16.mxu1 %vm1447_vm0, %v1446_v1 }
 0x161   :  { %1295 = vmatmul.mubr.bf16.gmra.mrb[100].mxu1 %v397_v25 }
 0x162   :  { %1298 = vmatprep.mubr.msk.bf16.mxu1 %vm1447_vm0, %v1446_v1 }
 0x169   :  { %1299 = vmatmul.mubr.bf16.gmra.mrb[104].mxu1 %v398_v45 }
 0x16a   :  { %1302 = vmatprep.mubr.msk.bf16.mxu1 %vm1447_vm0, %v1446_v1 }
 0x171   :  { %1303 = vmatmul.mubr.bf16.gmra.mrb[108].mxu1 %v399_v2 }
 0x1b4   :  { %v505_v30 = vpop.f32.mrb[36].mxu1 }
 0x1b5   :  { %v506_v49 = vadd.f32 %v1835_v4, %v505_v30  ;;  %v1232_v7 = vpop.f32.mrb[37].mxu1 }
 0x1b6   :  { %v508_v27 = vpop.f32.mrb[38].mxu1 }
 0x1b7   :  { %v509_v48 = vadd.f32 %v1835_v4, %v508_v27  ;;  %v1233_v5 = vpop.f32.mrb[39].mxu1  ;;  %v656_v6 = vmax.f32 %v506_v49, 0.0 }
 0x1b9   :  { %v657_v8 = vmax.f32 %v509_v48, 0.0 }
 0x1bb   :  { %v694_v9 = vpack.c.bf16 %v657_v8, %v656_v6 }
 0x1bc   :  { %v513_v10 = vpop.f32.mrb[40].mxu1 }
 0x1bd   :  { %v514_v11 = vadd.f32 %v1835_v4, %v513_v10  ;;  %v1236_v12 = vpop.f32.mrb[41].mxu1  ;;  %1323 = vmatmul.mubr.bf16.vlgmr.msra.gmra.mrb[40].mxu0 %v694_v9 }
 0x1be   :  { %v516_v13 = vpop.f32.mrb[42].mxu1  ;;  %1326 = vmatprep.mubr.msk.bf16.mxu0 %vm1447_vm0, %v1446_v1 }
 0x1bf   :  { %v517_v14 = vadd.f32 %v1835_v4, %v516_v13  ;;  %v1237_v15 = vpop.f32.mrb[43].mxu1  ;;  %v658_v16 = vmax.f32 %v514_v11, 0.0 }
 0x1c1   :  { %v659_v17 = vmax.f32 %v517_v14, 0.0 }
 0x1c3   :  { %v695_v18 = vpack.c.bf16 %v659_v17, %v658_v16 }
 0x1c4   :  { %v521_v19 = vpop.f32.mrb[44].mxu1 }
 0x1c5   :  { %v522_v20 = vadd.f32 %v1835_v4, %v521_v19  ;;  %v1240_v21 = vpop.f32.mrb[45].mxu1  ;;  %1327 = vmatmul.mubr.bf16.gmra.mrb[44].mxu0 %v695_v18 }
 0x1c6   :  { %v524_v22 = vpop.f32.mrb[46].mxu1  ;;  %1330 = vmatprep.mubr.msk.bf16.mxu0 %vm1447_vm0, %v1446_v1 }
 0x1c7   :  { %v525_v23 = vadd.f32 %v1835_v4, %v524_v22  ;;  %v1241_v24 = vpop.f32.mrb[47].mxu1  ;;  %v660_v25 = vmax.f32 %v522_v20, 0.0 }
 0x1c9   :  { %v661_v26 = vmax.f32 %v525_v23, 0.0 }
 0x1cb   :  { %v696_v28 = vpack.c.bf16 %v661_v26, %v660_v25 }
 0x1cc   :  { %v529_v29 = vpop.f32.mrb[48].mxu1 }
 0x1cd   :  { %v530_v31 = vadd.f32 %v1835_v4, %v529_v29  ;;  %v1244_v32 = vpop.f32.mrb[49].mxu1  ;;  %1331 = vmatmul.mubr.bf16.gmra.mrb[48].mxu0 %v696_v28 }
 0x1ce   :  { %v532_v33 = vpop.f32.mrb[50].mxu1  ;;  %1334 = vmatprep.mubr.msk.bf16.mxu0 %vm1447_vm0, %v1446_v1 }
 0x1cf   :  { %v533_v34 = vadd.f32 %v1835_v4, %v532_v33  ;;  %v1245_v35 = vpop.f32.mrb[51].mxu1  ;;  %v662_v36 = vmax.f32 %v530_v31, 0.0 }
 0x1d1   :  { %v663_v37 = vmax.f32 %v533_v34, 0.0 }
 0x1d3   :  { %v697_v38 = vpack.c.bf16 %v663_v37, %v662_v36 }
 0x1d4   :  { %v537_v39 = vpop.f32.mrb[52].mxu1 }
 0x1d5   :  { %v538_v40 = vadd.f32 %v1835_v4, %v537_v39  ;;  %v1248_v41 = vpop.f32.mrb[53].mxu1  ;;  %1335 = vmatmul.mubr.bf16.gmra.mrb[52].mxu0 %v697_v38 }
 0x1d6   :  { %v540_v42 = vpop.f32.mrb[54].mxu1  ;;  %1338 = vmatprep.mubr.msk.bf16.mxu0 %vm1447_vm0, %v1446_v1 }
 0x1d7   :  { %v541_v43 = vadd.f32 %v1835_v4, %v540_v42  ;;  %v1249_v44 = vpop.f32.mrb[55].mxu1  ;;  %v664_v45 = vmax.f32 %v538_v40, 0.0 }
 0x1d9   :  { %v665_v46 = vmax.f32 %v541_v43, 0.0 }
 0x1db   :  { %v698_v47 = vpack.c.bf16 %v665_v46, %v664_v45 }
 0x1dc   :  { %v545_v50 = vpop.f32.mrb[56].mxu1 }
 0x1dd   :  { %v546_v51 = vadd.f32 %v1835_v4, %v545_v50  ;;  %v1252_v52 = vpop.f32.mrb[57].mxu1  ;;  %1339 = vmatmul.mubr.bf16.gmra.mrb[56].mxu0 %v698_v47 }
 0x1de   :  { %v548_v53 = vpop.f32.mrb[58].mxu1  ;;  %1342 = vmatprep.mubr.msk.bf16.mxu0 %vm1447_vm0, %v1446_v1 }
 0x1df   :  { %v549_v54 = vadd.f32 %v1835_v4, %v548_v53  ;;  %v1253_v55 = vpop.f32.mrb[59].mxu1  ;;  %v666_v56 = vmax.f32 %v546_v51, 0.0 }
 0x1e1   :  { %v667_v57 = vmax.f32 %v549_v54, 0.0 }
 0x1e3   :  { %v699_v58 = vpack.c.bf16 %v667_v57, %v666_v56 }
 0x1e4   :  { %v553_v59 = vpop.f32.mrb[60].mxu1 }
 0x1e5   :  { %v554_v60 = vadd.f32 %v1835_v4, %v553_v59  ;;  %v1256_v61 = vpop.f32.mrb[61].mxu1  ;;  %1343 = vmatmul.mubr.bf16.gmra.mrb[60].mxu0 %v699_v58 }
 0x1e6   :  { %v556_v62 = vpop.f32.mrb[62].mxu1  ;;  %1346 = vmatprep.mubr.msk.bf16.mxu0 %vm1447_vm0, %v1446_v1 }
 0x1e7   :  { %v557_v63 = vadd.f32 %v1835_v4, %v556_v62  ;;  %v1257_v0 = vpop.f32.mrb[63].mxu1  ;;  %v668_v2 = vmax.f32 %v554_v60, 0.0 }
 0x1e9   :  { %v669_v3 = vmax.f32 %v557_v63, 0.0 }
 0x1eb   :  { %v700_v30 = vpack.c.bf16 %v669_v3, %v668_v2 }
 0x1ec   :  { %v561_v49 = vpop.f32.mrb[64].mxu1 }
 0x1ed   :  { %v562_v7 = vadd.f32 %v1835_v4, %v561_v49  ;;  %v1260_v27 = vpop.f32.mrb[65].mxu1  ;;  %1347 = vmatmul.mubr.bf16.gmra.mrb[64].mxu0 %v700_v30 }
 0x1ee   :  { %v564_v48 = vpop.f32.mrb[66].mxu1  ;;  %1350 = vmatprep.mubr.msk.bf16.mxu0 %vm1447_vm0, %v1446_v1 }
 0x1ef   :  { %v565_v5 = vadd.f32 %v1835_v4, %v564_v48  ;;  %v1261_v6 = vpop.f32.mrb[67].mxu1  ;;  %v670_v8 = vmax.f32 %v562_v7, 0.0 }
 0x1f1   :  { %v671_v9 = vmax.f32 %v565_v5, 0.0 }
 0x1f3   :  { %v701_v10 = vpack.c.bf16 %v671_v9, %v670_v8 }
 0x1f4   :  { %v569_v11 = vpop.f32.mrb[68].mxu1 }
 0x1f5   :  { %v570_v12 = vadd.f32 %v1835_v4, %v569_v11  ;;  %v1264_v13 = vpop.f32.mrb[69].mxu1  ;;  %1351 = vmatmul.mubr.bf16.gmra.mrb[68].mxu0 %v701_v10 }
 0x1f6   :  { %v572_v14 = vpop.f32.mrb[70].mxu1  ;;  %1354 = vmatprep.mubr.msk.bf16.mxu0 %vm1447_vm0, %v1446_v1 }
 0x1f7   :  { %v573_v15 = vadd.f32 %v1835_v4, %v572_v14  ;;  %v1265_v16 = vpop.f32.mrb[71].mxu1  ;;  %v672_v17 = vmax.f32 %v570_v12, 0.0 }
 0x1f9   :  { %v673_v18 = vmax.f32 %v573_v15, 0.0 }
 0x1fb   :  { %v702_v19 = vpack.c.bf16 %v673_v18, %v672_v17 }
 0x1fc   :  { %v577_v20 = vpop.f32.mrb[72].mxu1 }
 0x1fd   :  { %v578_v21 = vadd.f32 %v1835_v4, %v577_v20  ;;  %v1268_v22 = vpop.f32.mrb[73].mxu1  ;;  %1355 = vmatmul.mubr.bf16.gmra.mrb[72].mxu0 %v702_v19 }
 0x1fe   :  { %v580_v23 = vpop.f32.mrb[74].mxu1  ;;  %1358 = vmatprep.mubr.msk.bf16.mxu0 %vm1447_vm0, %v1446_v1 }
 0x1ff   :  { %v581_v24 = vadd.f32 %v1835_v4, %v580_v23  ;;  %v1269_v25 = vpop.f32.mrb[75].mxu1  ;;  %v674_v26 = vmax.f32 %v578_v21, 0.0 }
 0x201   :  { %v675_v28 = vmax.f32 %v581_v24, 0.0 }
 0x203   :  { %v703_v29 = vpack.c.bf16 %v675_v28, %v674_v26 }
 0x204   :  { %v585_v31 = vpop.f32.mrb[76].mxu1 }
 0x205   :  { %v586_v32 = vadd.f32 %v1835_v4, %v585_v31  ;;  %v1272_v33 = vpop.f32.mrb[77].mxu1  ;;  %1359 = vmatmul.mubr.bf16.gmra.mrb[76].mxu0 %v703_v29 }
 0x206   :  { %v588_v34 = vpop.f32.mrb[78].mxu1  ;;  %1362 = vmatprep.mubr.msk.bf16.mxu0 %vm1447_vm0, %v1446_v1 }
 0x207   :  { %v589_v35 = vadd.f32 %v1835_v4, %v588_v34  ;;  %v1273_v36 = vpop.f32.mrb[79].mxu1  ;;  %v676_v37 = vmax.f32 %v586_v32, 0.0 }
 0x209   :  { %v677_v38 = vmax.f32 %v589_v35, 0.0 }
 0x20b   :  { %v704_v39 = vpack.c.bf16 %v677_v38, %v676_v37 }
 0x20c   :  { %v593_v40 = vpop.f32.mrb[80].mxu1 }
 0x20d   :  { %v594_v41 = vadd.f32 %v1835_v4, %v593_v40  ;;  %v1276_v42 = vpop.f32.mrb[81].mxu1  ;;  %1363 = vmatmul.mubr.bf16.gmra.mrb[80].mxu0 %v704_v39 }
 0x20e   :  { %v596_v43 = vpop.f32.mrb[82].mxu1  ;;  %1366 = vmatprep.mubr.msk.bf16.mxu0 %vm1447_vm0, %v1446_v1 }
 0x20f   :  { %v597_v44 = vadd.f32 %v1835_v4, %v596_v43  ;;  %v1277_v45 = vpop.f32.mrb[83].mxu1  ;;  %v678_v46 = vmax.f32 %v594_v41, 0.0 }
 0x211   :  { %v679_v47 = vmax.f32 %v597_v44, 0.0 }
 0x213   :  { %v705_v50 = vpack.c.bf16 %v679_v47, %v678_v46 }
 0x214   :  { %v601_v51 = vpop.f32.mrb[84].mxu1 }
 0x215   :  { %v602_v52 = vadd.f32 %v1835_v4, %v601_v51  ;;  %v1280_v53 = vpop.f32.mrb[85].mxu1  ;;  %1367 = vmatmul.mubr.bf16.gmra.mrb[84].mxu0 %v705_v50 }
 0x216   :  { %v604_v54 = vpop.f32.mrb[86].mxu1  ;;  %1370 = vmatprep.mubr.msk.bf16.mxu0 %vm1447_vm0, %v1446_v1 }
 0x217   :  { %v605_v55 = vadd.f32 %v1835_v4, %v604_v54  ;;  %v1281_v56 = vpop.f32.mrb[87].mxu1  ;;  %v680_v57 = vmax.f32 %v602_v52, 0.0  ;;  %v1914_v52 = vld [vmem:[%s1972_s6] ss:$0 sm:$0xff]  ;;  %s1448_s6 = smov [#allocation2]  }
 0x218   :  { %s1012_s15 = sshll.u32 %s1448_s6, 4  ;;  %s1013_s15 = int_to_ptr.vmem [resolvable:$true] %s1012_s15 }
 0x219   :  { %v681_v58 = vmax.f32 %v605_v55, 0.0  ;;  %s1422_s16 = scalar_lea.vmem %s1013_s15, 4864  ;;  %p1427_p1 = scmp.lt.s32.totalorder %s1013_s15, %s1013_s15 }
 0x21a   :  { %p1423_p0 = scmp.ne.s32.totalorder %s1013_s15, %s1422_s16  ;;  %p1428_p2 = scmp.lt.s32.totalorder %s1422_s16, %s1422_s16 }
 0x21b   :  { %v706_v59 = vpack.c.bf16 %v681_v58, %v680_v57 }
 0x21c   :  { %v609_v60 = vpop.f32.mrb[88].mxu1  ;;  %p1429_p3 = por %p1428_p2, %p1427_p1 }
 0x21d   :  { %v610_v61 = vadd.f32 %v1835_v4, %v609_v60  ;;  %v1284_v62 = vpop.f32.mrb[89].mxu1  ;;  %1371 = vmatmul.mubr.bf16.gmra.mrb[88].mxu0 %v706_v59 }
 0x21e   :  { %v612_v63 = vpop.f32.mrb[90].mxu1  ;;  %1374 = vmatprep.mubr.msk.bf16.mxu0 %vm1447_vm0, %v1446_v1  ;;  %p1430_p4 = pnand %p1429_p3, %p1423_p0 }
 0x21f   :  { %v613_v0 = vadd.f32 %v1835_v4, %v612_v63  ;;  %v1285_v2 = vpop.f32.mrb[91].mxu1  ;;  %v682_v3 = vmax.f32 %v610_v61, 0.0 }
 0x221   :  { %v683_v30 = vmax.f32 %v613_v0, 0.0 }
 0x223   :  { %v707_v49 = vpack.c.bf16 %v683_v30, %v682_v3 }
 0x224   :  { %v617_v7 = vpop.f32.mrb[92].mxu1 }
 0x225   :  { %v618_v27 = vadd.f32 %v1835_v4, %v617_v7  ;;  %v1288_v48 = vpop.f32.mrb[93].mxu1  ;;  %1375 = vmatmul.mubr.bf16.gmra.mrb[92].mxu0 %v707_v49 }
 0x226   :  { %v620_v5 = vpop.f32.mrb[94].mxu1  ;;  %1378 = vmatprep.mubr.msk.bf16.mxu0 %vm1447_vm0, %v1446_v1 }
 0x227   :  { %v621_v6 = vadd.f32 %v1835_v4, %v620_v5  ;;  %v1289_v8 = vpop.f32.mrb[95].mxu1  ;;  %v684_v9 = vmax.f32 %v618_v27, 0.0 }
 0x229   :  { %v685_v10 = vmax.f32 %v621_v6, 0.0 }
 0x22b   :  { %v708_v11 = vpack.c.bf16 %v685_v10, %v684_v9 }
 0x22c   :  { %v625_v12 = vpop.f32.mrb[96].mxu1 }
 0x22d   :  { %v626_v13 = vadd.f32 %v1835_v4, %v625_v12  ;;  %v1292_v14 = vpop.f32.mrb[97].mxu1  ;;  %1379 = vmatmul.mubr.bf16.gmra.mrb[96].mxu0 %v708_v11 }
 0x22e   :  { %v628_v15 = vpop.f32.mrb[98].mxu1  ;;  %1382 = vmatprep.mubr.msk.bf16.mxu0 %vm1447_vm0, %v1446_v1 }
 0x22f   :  { %v629_v16 = vadd.f32 %v1835_v4, %v628_v15  ;;  %v1293_v17 = vpop.f32.mrb[99].mxu1  ;;  %v686_v18 = vmax.f32 %v626_v13, 0.0 }
 0x231   :  { %v687_v19 = vmax.f32 %v629_v16, 0.0 }
 0x233   :  { %v709_v20 = vpack.c.bf16 %v687_v19, %v686_v18 }
 0x234   :  { %v633_v21 = vpop.f32.mrb[100].mxu1 }
 0x235   :  { %v634_v22 = vadd.f32 %v1835_v4, %v633_v21  ;;  %v1296_v23 = vpop.f32.mrb[101].mxu1  ;;  %1383 = vmatmul.mubr.bf16.gmra.mrb[100].mxu0 %v709_v20 }
 0x236   :  { %v636_v24 = vpop.f32.mrb[102].mxu1  ;;  %1386 = vmatprep.mubr.msk.bf16.mxu0 %vm1447_vm0, %v1446_v1 }
 0x237   :  { %v637_v25 = vadd.f32 %v1835_v4, %v636_v24  ;;  %v1297_v26 = vpop.f32.mrb[103].mxu1  ;;  %v688_v28 = vmax.f32 %v634_v22, 0.0 }
 0x239   :  { %v689_v29 = vmax.f32 %v637_v25, 0.0 }
 0x23b   :  { %v710_v31 = vpack.c.bf16 %v689_v29, %v688_v28 }
 0x23c   :  { %v641_v32 = vpop.f32.mrb[104].mxu1 }
 0x23d   :  { %v642_v33 = vadd.f32 %v1835_v4, %v641_v32  ;;  %v1300_v34 = vpop.f32.mrb[105].mxu1  ;;  %1387 = vmatmul.mubr.bf16.gmra.mrb[104].mxu0 %v710_v31 }
 0x23e   :  { %v644_v35 = vpop.f32.mrb[106].mxu1  ;;  %1390 = vmatprep.mubr.msk.bf16.mxu0 %vm1447_vm0, %v1446_v1 }
 0x23f   :  { %v645_v36 = vadd.f32 %v1835_v4, %v644_v35  ;;  %v1301_v37 = vpop.f32.mrb[107].mxu1  ;;  %v690_v38 = vmax.f32 %v642_v33, 0.0 }
 0x241   :  { %v691_v39 = vmax.f32 %v645_v36, 0.0 }
 0x243   :  { %v711_v40 = vpack.c.bf16 %v691_v39, %v690_v38 }
 0x244   :  { %v649_v41 = vpop.f32.mrb[108].mxu1 }
 0x245   :  { %v650_v42 = vadd.f32 %v1835_v4, %v649_v41  ;;  %v1304_v43 = vpop.f32.mrb[109].mxu1  ;;  %1391 = vmatmul.mubr.bf16.gmra.mrb[108].mxu0 %v711_v40 }
 0x246   :  { %v652_v44 = vpop.f32.mrb[110].mxu1  ;;  %1394 = vmatprep.mubr.msk.bf16.mxu0 %vm1447_vm0, %v1446_v1 }
 0x247   :  { %v653_v45 = vadd.f32 %v1835_v4, %v652_v44  ;;  %v1305_v46 = vpop.f32.mrb[111].mxu1  ;;  %v692_v47 = vmax.f32 %v650_v42, 0.0 }
 0x249   :  { %v693_v50 = vmax.f32 %v653_v45, 0.0 }
 0x24b   :  { %v712_v51 = vpack.c.bf16 %v693_v50, %v692_v47 }
 0x24d   :  { %1395 = vmatmul.mubr.bf16.gmra.mrb[112].mxu0 %v712_v51 }
 0x290   :  { %v818_v53 = vpop.f32.mrb[40].mxu0 }
 0x291   :  { %v819_v54 = vadd.f32 %v1914_v52, %v818_v53  ;;  %v1324_v55 = vpop.f32.mrb[41].mxu0 }
 0x292   :  { %v821_v56 = vpop.f32.mrb[42].mxu0 }
 0x293   :  { %969 = vst [vmem:[#allocation2] sm:$0xff] %v819_v54  ;;  %v822_v1 = vadd.f32 %v1914_v52, %v821_v56  ;;  %v1325_v57 = vpop.f32.mrb[43].mxu0 }
 0x295   :  { %970 = vst [vmem:[#allocation2 + $0x8] sm:$0xff] %v822_v1 }
 0x298   :  { %v826_v4 = vpop.f32.mrb[44].mxu0 }
 0x299   :  { %v827_v58 = vadd.f32 %v1914_v52, %v826_v4  ;;  %v1328_v59 = vpop.f32.mrb[45].mxu0 }
 0x29a   :  { %v829_v60 = vpop.f32.mrb[46].mxu0 }
 0x29b   :  { %971 = vst [vmem:[#allocation2 + $0x10] sm:$0xff] %v827_v58  ;;  %v830_v61 = vadd.f32 %v1914_v52, %v829_v60  ;;  %v1329_v62 = vpop.f32.mrb[47].mxu0 }
 0x29d   :  { %972 = vst [vmem:[#allocation2 + $0x18] sm:$0xff] %v830_v61 }
 0x2a0   :  { %v834_v63 = vpop.f32.mrb[48].mxu0 }
 0x2a1   :  { %v835_v0 = vadd.f32 %v1914_v52, %v834_v63  ;;  %v1332_v2 = vpop.f32.mrb[49].mxu0 }
 0x2a2   :  { %v837_v3 = vpop.f32.mrb[50].mxu0 }
 0x2a3   :  { %973 = vst [vmem:[#allocation2 + $0x20] sm:$0xff] %v835_v0  ;;  %v838_v30 = vadd.f32 %v1914_v52, %v837_v3  ;;  %v1333_v49 = vpop.f32.mrb[51].mxu0 }
 0x2a5   :  { %974 = vst [vmem:[#allocation2 + $0x28] sm:$0xff] %v838_v30 }
 0x2a8   :  { %v842_v7 = vpop.f32.mrb[52].mxu0 }
 0x2a9   :  { %v843_v27 = vadd.f32 %v1914_v52, %v842_v7  ;;  %v1336_v48 = vpop.f32.mrb[53].mxu0 }
 0x2aa   :  { %v845_v5 = vpop.f32.mrb[54].mxu0 }
 0x2ab   :  { %975 = vst [vmem:[#allocation2 + $0x30] sm:$0xff] %v843_v27  ;;  %v846_v6 = vadd.f32 %v1914_v52, %v845_v5  ;;  %v1337_v8 = vpop.f32.mrb[55].mxu0 }
 0x2ad   :  { %976 = vst [vmem:[#allocation2 + $0x38] sm:$0xff] %v846_v6 }
 0x2b0   :  { %v850_v9 = vpop.f32.mrb[56].mxu0 }
 0x2b1   :  { %v851_v10 = vadd.f32 %v1914_v52, %v850_v9  ;;  %v1340_v11 = vpop.f32.mrb[57].mxu0 }
 0x2b2   :  { %v853_v12 = vpop.f32.mrb[58].mxu0 }
 0x2b3   :  { %977 = vst [vmem:[#allocation2 + $0x40] sm:$0xff] %v851_v10  ;;  %v854_v13 = vadd.f32 %v1914_v52, %v853_v12  ;;  %v1341_v14 = vpop.f32.mrb[59].mxu0 }
 0x2b5   :  { %978 = vst [vmem:[#allocation2 + $0x48] sm:$0xff] %v854_v13 }
 0x2b8   :  { %v858_v15 = vpop.f32.mrb[60].mxu0 }
 0x2b9   :  { %v859_v16 = vadd.f32 %v1914_v52, %v858_v15  ;;  %v1344_v17 = vpop.f32.mrb[61].mxu0 }
 0x2ba   :  { %v861_v18 = vpop.f32.mrb[62].mxu0 }
 0x2bb   :  { %979 = vst [vmem:[#allocation2 + $0x50] sm:$0xff] %v859_v16  ;;  %v862_v19 = vadd.f32 %v1914_v52, %v861_v18  ;;  %v1345_v20 = vpop.f32.mrb[63].mxu0 }
 0x2bd   :  { %980 = vst [vmem:[#allocation2 + $0x58] sm:$0xff] %v862_v19 }
 0x2c0   :  { %v866_v21 = vpop.f32.mrb[64].mxu0 }
 0x2c1   :  { %v867_v22 = vadd.f32 %v1914_v52, %v866_v21  ;;  %v1348_v23 = vpop.f32.mrb[65].mxu0 }
 0x2c2   :  { %v869_v24 = vpop.f32.mrb[66].mxu0 }
 0x2c3   :  { %981 = vst [vmem:[#allocation2 + $0x60] sm:$0xff] %v867_v22  ;;  %v870_v25 = vadd.f32 %v1914_v52, %v869_v24  ;;  %v1349_v26 = vpop.f32.mrb[67].mxu0 }
 0x2c5   :  { %982 = vst [vmem:[#allocation2 + $0x68] sm:$0xff] %v870_v25 }
 0x2c8   :  { %v874_v28 = vpop.f32.mrb[68].mxu0 }
 0x2c9   :  { %v875_v29 = vadd.f32 %v1914_v52, %v874_v28  ;;  %v1352_v31 = vpop.f32.mrb[69].mxu0 }
 0x2ca   :  { %v877_v32 = vpop.f32.mrb[70].mxu0 }
 0x2cb   :  { %983 = vst [vmem:[#allocation2 + $0x70] sm:$0xff] %v875_v29  ;;  %v878_v33 = vadd.f32 %v1914_v52, %v877_v32  ;;  %v1353_v34 = vpop.f32.mrb[71].mxu0 }
 0x2cd   :  { %984 = vst [vmem:[#allocation2 + $0x78] sm:$0xff] %v878_v33 }
 0x2d0   :  { %v882_v35 = vpop.f32.mrb[72].mxu0 }
 0x2d1   :  { %v883_v36 = vadd.f32 %v1914_v52, %v882_v35  ;;  %v1356_v37 = vpop.f32.mrb[73].mxu0 }
 0x2d2   :  { %v885_v38 = vpop.f32.mrb[74].mxu0 }
 0x2d3   :  { %985 = vst [vmem:[#allocation2 + $0x80] sm:$0xff] %v883_v36  ;;  %v886_v39 = vadd.f32 %v1914_v52, %v885_v38  ;;  %v1357_v40 = vpop.f32.mrb[75].mxu0 }
 0x2d5   :  { %986 = vst [vmem:[#allocation2 + $0x88] sm:$0xff] %v886_v39 }
 0x2d8   :  { %v890_v41 = vpop.f32.mrb[76].mxu0 }
 0x2d9   :  { %v891_v42 = vadd.f32 %v1914_v52, %v890_v41  ;;  %v1360_v43 = vpop.f32.mrb[77].mxu0 }
 0x2da   :  { %v893_v44 = vpop.f32.mrb[78].mxu0 }
 0x2db   :  { %987 = vst [vmem:[#allocation2 + $0x90] sm:$0xff] %v891_v42  ;;  %v894_v45 = vadd.f32 %v1914_v52, %v893_v44  ;;  %v1361_v46 = vpop.f32.mrb[79].mxu0 }
 0x2dd   :  { %988 = vst [vmem:[#allocation2 + $0x98] sm:$0xff] %v894_v45 }
 0x2e0   :  { %v898_v47 = vpop.f32.mrb[80].mxu0 }
 0x2e1   :  { %v899_v50 = vadd.f32 %v1914_v52, %v898_v47  ;;  %v1364_v51 = vpop.f32.mrb[81].mxu0 }
 0x2e2   :  { %v901_v53 = vpop.f32.mrb[82].mxu0 }
 0x2e3   :  { %989 = vst [vmem:[#allocation2 + $0xa0] sm:$0xff] %v899_v50  ;;  %v902_v54 = vadd.f32 %v1914_v52, %v901_v53  ;;  %v1365_v55 = vpop.f32.mrb[83].mxu0 }
 0x2e5   :  { %990 = vst [vmem:[#allocation2 + $0xa8] sm:$0xff] %v902_v54 }
 0x2e8   :  { %v906_v56 = vpop.f32.mrb[84].mxu0 }
 0x2e9   :  { %v907_v1 = vadd.f32 %v1914_v52, %v906_v56  ;;  %v1368_v57 = vpop.f32.mrb[85].mxu0 }
 0x2ea   :  { %v909_v4 = vpop.f32.mrb[86].mxu0 }
 0x2eb   :  { %991 = vst [vmem:[#allocation2 + $0xb0] sm:$0xff] %v907_v1  ;;  %v910_v58 = vadd.f32 %v1914_v52, %v909_v4  ;;  %v1369_v59 = vpop.f32.mrb[87].mxu0 }
 0x2ed   :  { %992 = vst [vmem:[#allocation2 + $0xb8] sm:$0xff] %v910_v58 }
 0x2f0   :  { %v914_v60 = vpop.f32.mrb[88].mxu0 }
 0x2f1   :  { %v915_v61 = vadd.f32 %v1914_v52, %v914_v60  ;;  %v1372_v62 = vpop.f32.mrb[89].mxu0 }
 0x2f2   :  { %v917_v63 = vpop.f32.mrb[90].mxu0 }
 0x2f3   :  { %993 = vst [vmem:[#allocation2 + $0xc0] sm:$0xff] %v915_v61  ;;  %v918_v0 = vadd.f32 %v1914_v52, %v917_v63  ;;  %v1373_v2 = vpop.f32.mrb[91].mxu0 }
 0x2f5   :  { %994 = vst [vmem:[#allocation2 + $0xc8] sm:$0xff] %v918_v0 }
 0x2f8   :  { %v922_v3 = vpop.f32.mrb[92].mxu0 }
 0x2f9   :  { %v923_v30 = vadd.f32 %v1914_v52, %v922_v3  ;;  %v1376_v49 = vpop.f32.mrb[93].mxu0 }
 0x2fa   :  { %v925_v7 = vpop.f32.mrb[94].mxu0 }
 0x2fb   :  { %995 = vst [vmem:[#allocation2 + $0xd0] sm:$0xff] %v923_v30  ;;  %v926_v27 = vadd.f32 %v1914_v52, %v925_v7  ;;  %v1377_v48 = vpop.f32.mrb[95].mxu0 }
 0x2fd   :  { %996 = vst [vmem:[#allocation2 + $0xd8] sm:$0xff] %v926_v27 }
 0x300   :  { %v930_v5 = vpop.f32.mrb[96].mxu0 }
 0x301   :  { %v931_v6 = vadd.f32 %v1914_v52, %v930_v5  ;;  %v1380_v8 = vpop.f32.mrb[97].mxu0 }
 0x302   :  { %v933_v9 = vpop.f32.mrb[98].mxu0 }
 0x303   :  { %997 = vst [vmem:[#allocation2 + $0xe0] sm:$0xff] %v931_v6  ;;  %v934_v10 = vadd.f32 %v1914_v52, %v933_v9  ;;  %v1381_v11 = vpop.f32.mrb[99].mxu0 }
 0x305   :  { %998 = vst [vmem:[#allocation2 + $0xe8] sm:$0xff] %v934_v10 }
 0x308   :  { %v938_v12 = vpop.f32.mrb[100].mxu0 }
 0x309   :  { %v939_v13 = vadd.f32 %v1914_v52, %v938_v12  ;;  %v1384_v14 = vpop.f32.mrb[101].mxu0 }
 0x30a   :  { %v941_v15 = vpop.f32.mrb[102].mxu0 }
 0x30b   :  { %999 = vst [vmem:[#allocation2 + $0xf0] sm:$0xff] %v939_v13  ;;  %v942_v16 = vadd.f32 %v1914_v52, %v941_v15  ;;  %v1385_v17 = vpop.f32.mrb[103].mxu0 }
 0x30d   :  { %1000 = vst [vmem:[#allocation2 + $0xf8] sm:$0xff] %v942_v16 }
 0x310   :  { %v946_v18 = vpop.f32.mrb[104].mxu0 }
 0x311   :  { %v947_v19 = vadd.f32 %v1914_v52, %v946_v18  ;;  %v1388_v20 = vpop.f32.mrb[105].mxu0 }
 0x312   :  { %v949_v21 = vpop.f32.mrb[106].mxu0 }
 0x313   :  { %1001 = vst [vmem:[#allocation2 + $0x100] sm:$0xff] %v947_v19  ;;  %v950_v22 = vadd.f32 %v1914_v52, %v949_v21  ;;  %v1389_v23 = vpop.f32.mrb[107].mxu0 }
 0x315   :  { %1002 = vst [vmem:[#allocation2 + $0x108] sm:$0xff] %v950_v22 }
 0x318   :  { %v954_v24 = vpop.f32.mrb[108].mxu0 }
 0x319   :  { %v955_v25 = vadd.f32 %v1914_v52, %v954_v24  ;;  %v1392_v26 = vpop.f32.mrb[109].mxu0 }
 0x31a   :  { %v957_v28 = vpop.f32.mrb[110].mxu0 }
 0x31b   :  { %1003 = vst [vmem:[#allocation2 + $0x110] sm:$0xff] %v955_v25  ;;  %v958_v29 = vadd.f32 %v1914_v52, %v957_v28  ;;  %v1393_v31 = vpop.f32.mrb[111].mxu0 }
 0x31d   :  { %1004 = vst [vmem:[#allocation2 + $0x118] sm:$0xff] %v958_v29 }
 0x320   :  { %v962_v32 = vpop.f32.mrb[112].mxu0 }
 0x321   :  { %v963_v33 = vadd.f32 %v1914_v52, %v962_v32  ;;  %v1396_v34 = vpop.f32.mrb[113].mxu0 }
 0x322   :  { %v965_v35 = vpop.f32.mrb[114].mxu0 }
 0x323   :  { %1005 = vst [vmem:[#allocation2 + $0x120] sm:$0xff] %v963_v33  ;;  %v966_v36 = vadd.f32 %v1914_v52, %v965_v35  ;;  %v1397_v37 = vpop.f32.mrb[115].mxu0 }
 0x325   :  { %1006 = vst [vmem:[#allocation2 + $0x128] sm:$0xff] %v966_v36 }
 0x326   :  { %1433 = shalt.err (!%p1430_p4)
}
 0x327   :  { %s1434_s19 = scalar_lea.hbm %s1973_s7, 4864 }
 0x328   :  { %p1435_p5 = scmp.ne.s32.totalorder %s1973_s7, %s1434_s19  ;;  %p1438_p6 = scmp.lt.u32.totalorder %s1434_s19, %s1973_s7 }
 0x32a   :  { %p1440_p7 = pnand %p1438_p6, %p1435_p5 }
 0x32c   :  { %1443 = shalt.err (!%p1440_p7)
}
 0x32d   :  { %s1449_s0 = smov 128   ;;  %s1450_s2 = smov 8  }
 0x32e   :  { %1018 = dma.vmem_to_hbm [thread:$0]  %s1013_s15, 4864, %s1973_s7, [#allocation3], %s1449_s0, %s1449_s0, %s1450_s2  }
 0x32f   :  { %1444 = dma.done.wait [#allocation3], 4864  }
 0x330   :  { %1445 = vsyncadd [#allocation3], 4294962432 }
 0x331   :  { %1022 = vsyncpa [#allocation3], 1 }

</bundles_post_ra>
